<compile_context>
chip_gen: v7x
topology: tpu7x:2x2x1
jax: 0.10.0
libtpu: 0.0.40
codegen_flags: <defaults>
</compile_context>

<pallas_src>
import functools

import jax
import jax.numpy as jnp
from jax.experimental import pallas as pl
from jax.experimental.pallas import tpu as pltpu


def _round_up(x, m):
    return (x + m - 1) // m * m


def _lora_linear_kernel(x_ref, wraw_ref, braw_ref, wdown_ref, wup_ref, o_ref,
                        *, scale):
    """One (tile_m, tile_n) output tile of the fused LoRA linear."""
    x = x_ref[...]
    # Frozen / raw linear path (MXU, f32 accumulation).
    raw = jnp.dot(x, wraw_ref[...], preferred_element_type=jnp.float32)
    raw = raw + braw_ref[...]                       # (tm, tn) + (1, tn)
    # LoRA path: down projection, scale the *small* (tm, rank) intermediate,
    # then up projection.  Scaling here instead of on the (tm, tn) output
    # cuts the VALU multiply count by c_out/rank.
    down = jnp.dot(x, wdown_ref[...], preferred_element_type=jnp.float32)
    down = (down * scale).astype(x.dtype)
    up = jnp.dot(down, wup_ref[...], preferred_element_type=jnp.float32)
    o_ref[...] = (raw + up).astype(o_ref.dtype)


def lora_linear(x, w_raw, b_raw, w_down, w_up, *, alpha, rank,
                tile_m=256, tile_n=256):
    """Fused LoRA-linear forward.

    Args:
      x:      [B, L, C_in]
      w_raw:  [C_in, C_out]   (transposed vs. PyTorch nn.Linear weight)
      b_raw:  [1, C_out]
      w_down: [C_in, rank]
      w_up:   [rank, C_out]
    Returns:
      [B, L, C_out]
    """
    B, L, c_in = x.shape
    c_out = w_raw.shape[1]
    m = B * L
    scale = (float(alpha) / float(rank)) if alpha else 1.0

    itemsize = jnp.dtype(x.dtype).itemsize
    sublane = {4: 8, 2: 16, 1: 32}.get(itemsize, 8)   # sublane packing granule

    # Effective tile sizes: big for real shapes, clamped (but still aligned)
    # for small problems.  tile_n is a multiple of 128 -> lane-dense output.
    tm = min(tile_m, _round_up(m, sublane))
    tn = min(tile_n, _round_up(c_out, 128))
    m_pad = _round_up(m, tm)
    n_pad = _round_up(c_out, tn)

    x2 = x.reshape(m, c_in)
    if m_pad != m:
        x2 = jnp.pad(x2, ((0, m_pad - m), (0, 0)))
    if n_pad != c_out:
        w_raw = jnp.pad(w_raw, ((0, 0), (0, n_pad - c_out)))
        b_raw = jnp.pad(b_raw, ((0, 0), (0, n_pad - c_out)))
        w_up = jnp.pad(w_up, ((0, 0), (0, n_pad - c_out)))

    grid = (m_pad // tm, n_pad // tn)

    # Explicit VMEM budget: double buffers for pipelined operands, single
    # buffer for the grid-invariant w_down, plus headroom; capped for v7x.
    r_pad = max(rank, sublane)
    vmem_bytes = (
        2 * tm * c_in * itemsize            # x tile
        + 2 * c_in * tn * itemsize          # raw weight tile
        + 2 * 8 * tn * itemsize             # bias tile (sublane padded)
        + 1 * c_in * r_pad * itemsize       # lora down (single buffer)
        + 2 * r_pad * tn * itemsize         # lora up tile
        + 2 * tm * tn * itemsize            # output tile
    )
    vmem_limit = int(min(2 * vmem_bytes + (8 << 20), 64 << 20))

    out = pl.pallas_call(
        functools.partial(_lora_linear_kernel, scale=scale),
        out_shape=jax.ShapeDtypeStruct((m_pad, n_pad), x.dtype),
        grid_spec=pltpu.PrefetchScalarGridSpec(
            num_scalar_prefetch=0,
            grid=grid,
            in_specs=[
                pl.BlockSpec((tm, c_in), lambda i, j: (i, 0)),      # x tile
                pl.BlockSpec((c_in, tn), lambda i, j: (0, j)),      # raw weight
                pl.BlockSpec((1, tn), lambda i, j: (0, j)),         # raw bias
                pl.BlockSpec((c_in, rank), lambda i, j: (0, 0),     # lora down
                             pipeline_mode=pl.Buffered(1)),
                pl.BlockSpec((rank, tn), lambda i, j: (0, j)),      # lora up
            ],
            out_specs=pl.BlockSpec((tm, tn), lambda i, j: (i, j)),
        ),
        compiler_params=pltpu.CompilerParams(
            dimension_semantics=("parallel", "parallel"),
            vmem_limit_bytes=vmem_limit,
        ),
    )(x2, w_raw, b_raw, w_down, w_up)

    return out[:m, :c_out].reshape(B, L, c_out)


if __name__ == "__main__":
    # Small shapes consistent with the module's forward ([B, L, C] in / out).
    B, L = 2, 8
    in_features = 32
    out_features = 32
    rank = 8
    alpha = 16.0
    dtype = jnp.float32

    key = jax.random.PRNGKey(0)
    k_x, k_raw_w, k_raw_b, k_down, k_up = jax.random.split(key, 5)

    x = jax.random.normal(k_x, (B, L, in_features), dtype=dtype)

    # Parameter init mirroring the PyTorch module (down ~ N(0, 1/rank),
    # raw_layer = Linear(in, out)).  The module inits up.weight to zero, which
    # would make the LoRA path trivially zero; use small nonzero values here so
    # the test actually exercises the low-rank path.
    w_down = (jax.random.normal(k_down, (in_features, rank), dtype=dtype)
              * (1.0 / rank))
    w_up = jax.random.normal(k_up, (rank, out_features), dtype=dtype) * 0.02
    w_raw = jax.random.normal(k_raw_w, (in_features, out_features),
                              dtype=dtype) * 0.05
    b_raw = jax.random.normal(k_raw_b, (1, out_features), dtype=dtype) * 0.01

    out = lora_linear(x, w_raw, b_raw, w_down, w_up, alpha=alpha, rank=rank)
    out = jax.block_until_ready(out)

    # Pure-JAX reference for correctness.
    x2 = x.reshape(-1, in_features)
    ref = (x2 @ w_raw + b_raw) + (alpha / rank) * ((x2 @ w_down) @ w_up)
    ref = ref.reshape(B, L, out_features)

    assert out.shape == (B, L, out_features)
    assert jnp.allclose(out, ref, atol=1e-4, rtol=1e-4), (
        float(jnp.max(jnp.abs(out - ref))))
    print("KERNEL_OK")
</pallas_src>

<mosaic_0001>
module attributes {stable_mosaic.version = 11 : i64} {
  func.func @_lora_linear_kernel(%arg0: i32, %arg1: i32, %arg2: memref<16x32xf32, #tpu.memory_space<vmem>>, %arg3: memref<32x128xf32, #tpu.memory_space<vmem>>, %arg4: memref<1x128xf32, #tpu.memory_space<vmem>>, %arg5: memref<32x8xf32, #tpu.memory_space<vmem>>, %arg6: memref<8x128xf32, #tpu.memory_space<vmem>>, %arg7: memref<16x128xf32, #tpu.memory_space<vmem>>) attributes {dimension_semantics = [#tpu.dimension_semantics<parallel>, #tpu.dimension_semantics<parallel>], iteration_bounds = array<i64: 1, 1>, scalar_prefetch = 0 : i64, scratch_operands = 0 : i64, tpu.core_type = #tpu.core_type<tc>, window_params = [{transform_indices = @transform_0, window_bounds = array<i64: 16, 32>}, {transform_indices = @transform_1, window_bounds = array<i64: 32, 128>}, {transform_indices = @transform_2, window_bounds = array<i64: 1, 128>}, {pipeline_mode = #tpu.pipeline_mode<synchronous>, transform_indices = @transform_3, window_bounds = array<i64: 32, 8>}, {transform_indices = @transform_4, window_bounds = array<i64: 8, 128>}, {transform_indices = @transform_5, window_bounds = array<i64: 16, 128>}]} {
    %c0 = arith.constant 0 : index
    %c0_0 = arith.constant 0 : index
    %0 = vector.load %arg2[%c0, %c0_0] : memref<16x32xf32, #tpu.memory_space<vmem>>, vector<16x32xf32>
    %c0_1 = arith.constant 0 : index
    %c0_2 = arith.constant 0 : index
    %1 = vector.load %arg3[%c0_1, %c0_2] : memref<32x128xf32, #tpu.memory_space<vmem>>, vector<32x128xf32>
    %cst = arith.constant dense<0.000000e+00> : vector<16x128xf32>
    %2 = tpu.matmul %0, %1, %cst {dimension_numbers = #tpu.dot_dimension_numbers<[1], [0], [0], [1], [0, 0, 1, 1], [], []>} : vector<16x32xf32>, vector<32x128xf32>, vector<16x128xf32> -> vector<16x128xf32>
    %c0_3 = arith.constant 0 : index
    %c0_4 = arith.constant 0 : index
    %3 = vector.load %arg4[%c0_3, %c0_4] : memref<1x128xf32, #tpu.memory_space<vmem>>, vector<1x128xf32>
    %4 = vector.broadcast %3 : vector<1x128xf32> to vector<16x128xf32>
    %5 = arith.addf %2, %4 : vector<16x128xf32>
    %c0_5 = arith.constant 0 : index
    %c0_6 = arith.constant 0 : index
    %6 = vector.load %arg5[%c0_5, %c0_6] : memref<32x8xf32, #tpu.memory_space<vmem>>, vector<32x8xf32>
    %cst_7 = arith.constant dense<0.000000e+00> : vector<16x8xf32>
    %7 = tpu.matmul %0, %6, %cst_7 {dimension_numbers = #tpu.dot_dimension_numbers<[1], [0], [0], [1], [0, 0, 1, 1], [], []>} : vector<16x32xf32>, vector<32x8xf32>, vector<16x8xf32> -> vector<16x8xf32>
    %cst_8 = arith.constant 2.000000e+00 : f32
    %8 = vector.broadcast %cst_8 : f32 to vector<16x8xf32>
    %9 = arith.mulf %7, %8 : vector<16x8xf32>
    %c0_9 = arith.constant 0 : index
    %c0_10 = arith.constant 0 : index
    %10 = vector.load %arg6[%c0_9, %c0_10] : memref<8x128xf32, #tpu.memory_space<vmem>>, vector<8x128xf32>
    %cst_11 = arith.constant dense<0.000000e+00> : vector<16x128xf32>
    %11 = tpu.matmul %9, %10, %cst_11 {dimension_numbers = #tpu.dot_dimension_numbers<[1], [0], [0], [1], [0, 0, 1, 1], [], []>} : vector<16x8xf32>, vector<8x128xf32>, vector<16x128xf32> -> vector<16x128xf32>
    %12 = arith.addf %5, %11 : vector<16x128xf32>
    %c0_12 = arith.constant 0 : index
    %c0_13 = arith.constant 0 : index
    %13 = vector.load %arg7[%c0_12, %c0_13] : memref<16x128xf32, #tpu.memory_space<vmem>>, vector<16x128xf32>
    tpu.vector_store %arg7[%c0_12, %c0_13], %12 {strides = array<i32>} : memref<16x128xf32, #tpu.memory_space<vmem>>, vector<16x128xf32>,
    return
  }
  func.func @transform_0(%arg0: i32, %arg1: i32) -> (i32, i32) {
    %c0_i32 = arith.constant 0 : i32
    %c0_i32_0 = arith.constant 0 : i32
    return %arg0, %c0_i32 : i32, i32
  }
  func.func @transform_1(%arg0: i32, %arg1: i32) -> (i32, i32) {
    %c0_i32 = arith.constant 0 : i32
    %c0_i32_0 = arith.constant 0 : i32
    return %c0_i32, %arg1 : i32, i32
  }
  func.func @transform_2(%arg0: i32, %arg1: i32) -> (i32, i32) {
    %c0_i32 = arith.constant 0 : i32
    %c0_i32_0 = arith.constant 0 : i32
    return %c0_i32, %arg1 : i32, i32
  }
  func.func @transform_3(%arg0: i32, %arg1: i32) -> (i32, i32) {
    %c0_i32 = arith.constant 0 : i32
    %c0_i32_0 = arith.constant 0 : i32
    %c0_i32_1 = arith.constant 0 : i32
    return %c0_i32, %c0_i32_0 : i32, i32
  }
  func.func @transform_4(%arg0: i32, %arg1: i32) -> (i32, i32) {
    %c0_i32 = arith.constant 0 : i32
    %c0_i32_0 = arith.constant 0 : i32
    return %c0_i32, %arg1 : i32, i32
  }
  func.func @transform_5(%arg0: i32, %arg1: i32) -> (i32, i32) {
    %c0_i32 = arith.constant 0 : i32
    return %arg0, %arg1 : i32, i32
  }
}

</mosaic_0001>

<bundles_post_ra>
// kernel: tpu_custom_call.1
= control target key start
LH: loop header
LB: loop body
LE: loop exit
PB: predicated region body
PF: predicated region fallthrough
CT: control target
= control target key end

     0   :  { %10 = vsyncpa [#allocation3], 0  ;;  %s534_s0 = inlined_call_operand.hbm [shape: f32[16,32], index: 0, kind: input, shape index: {}]   ;;  %s535_s1 = inlined_call_operand.vmem [shape: f32[32,128], index: 1, kind: input, shape index: {}]   ;;  %s536_s2 = inlined_call_operand.vmem [shape: f32[1,128], index: 2, kind: input, shape index: {}]   ;;  %s537_s3 = inlined_call_operand.vmem [shape: f32[32,8], index: 3, kind: input, shape index: {}]   ;;  %s538_s4 = inlined_call_operand.vmem [shape: f32[8,128], index: 4, kind: input, shape index: {}]   ;;  %s539_s5 = inlined_call_operand.hbm [shape: f32[16,128], index: 5, kind: output, shape index: {}]  }
   0x1   :  { %11 = vsyncpa [#allocation4], 0  ;;  %s436_s18 = smov [#allocation2]   ;;  %s388_s22 = scalar_lea.hbm %s534_s0, 256 }
   0x2   :  { %s17_s19 = sshll.u32 %s436_s18, 4  ;;  %p389_p0 = scmp.ne.s32.totalorder %s534_s0, %s388_s22  ;;  %s18_s19 = int_to_ptr.vmem [resolvable:$true] %s17_s19 }
   0x3   :  { %p392_p1 = scmp.lt.u32.totalorder %s388_s22, %s534_s0 }
   0x5   :  { %p394_p2 = pnand %p392_p1, %p389_p0 }
   0x7   :  { %397 = shalt.err (!%p394_p2)
}
   0x8   :  { %s398_s27 = scalar_lea.vmem %s18_s19, 256  ;;  %p403_p4 = scmp.lt.s32.totalorder %s18_s19, %s18_s19 }
   0x9   :  { %p399_p3 = scmp.ne.s32.totalorder %s18_s19, %s398_s27  ;;  %p404_p5 = scmp.lt.s32.totalorder %s398_s27, %s398_s27 }
   0xb   :  { %p405_p6 = por %p404_p5, %p403_p4 }
   0xd   :  { %p406_p7 = pnand %p405_p6, %p399_p3 }
   0xf   :  { %409 = shalt.err (!%p406_p7)
}
  0x10   :  { %s437_s28 = smov 128   ;;  %s438_s29 = smov 8  }
  0x11   :  { %23 = dma.hbm_to_vmem [thread:$0]  %s534_s0, 256, %s18_s19, [#allocation3], %s437_s28, %s437_s28, %s438_s29  }
  0x12   :  { %432 = dma.done.wait [#allocation3], 256  }
  0x13   :  { %433 = vsyncadd [#allocation3], 4294967040  ;;  %vm48_vm0 = vcmask 261120   ;;  %v130_v0 = vld [vmem:[%s537_s3] sm:$0xff]  ;;  %v131_v1 = vld [vmem:[%s537_s3 + $0x8] sm:$0xff]  ;;  %vm212_vm1 = vcmask 64512  }
  0x14   :  { %v132_v2 = vld [vmem:[%s537_s3 + $0x10] sm:$0xff]  ;;  %v372_v3 = vpack.c.bf16 %v131_v1, %v130_v0  ;;  %v133_v4 = vld [vmem:[%s537_s3 + $0x18] sm:$0xff]  ;;  %v35_v5 = vld [vmem:[#allocation2] sm:$0xff]  ;;  %s439_s24 = smov [#allocation5]  }
  0x15   :  { %v376_v6 = vpack.c.bf16 %v133_v4, %v132_v2  ;;  %356 = vmatprep.mubr.msk.f32.mxu1 %vm48_vm0, %v35_v5  ;;  %v37_v7 = vld [vmem:[%s535_s1] sm:$0xff]  ;;  %v38_v8 = vld [vmem:[%s535_s1 + $0x8] sm:$0xff]  ;;  %v39_v9 = vld [vmem:[%s535_s1 + $0x10] sm:$0xff]  ;;  %345 = vmatprep.mubr.msk.f32.mxu0 %vm48_vm0, %v35_v5 }
  0x16   :  { %373 = vmatprep.subr.bf16.mxu1 %v372_v3  ;;  %v364_v10 = vpack.c.bf16 %v38_v8, %v37_v7  ;;  %v40_v11 = vld [vmem:[%s535_s1 + $0x18] sm:$0xff]  ;;  %v36_v13 = vld [vmem:[#allocation2 + $0x8] sm:$0xff]  ;;  %v211_v14 = vld [vmem:[%s538_s4] sm:$0xff]  ;;  %s303_s4 = sshll.u32 %s439_s24, 4  ;;  %s304_s4 = int_to_ptr.vmem [resolvable:$true] %s303_s4 }
  0x17   :  { %375 = vmatpush3.bf16.msra.mxu1 %v372_v3  ;;  %v368_v12 = vpack.c.bf16 %v40_v11, %v39_v9  ;;  %v315_v19 = vld [vmem:[%s536_s2] ss:$0 sm:$0xff]  ;;  %s410_s25 = scalar_lea.vmem %s304_s4, 256  ;;  %p415_p9 = scmp.lt.s32.totalorder %s304_s4, %s304_s4 }
  0x18   :  { %377 = vmatprep.subr.bf16.mxu1 %v376_v6  ;;  %365 = vmatprep.subr.bf16.mxu0 %v364_v10  ;;  %p411_p8 = scmp.ne.s32.totalorder %s304_s4, %s410_s25  ;;  %p416_p10 = scmp.lt.s32.totalorder %s410_s25, %s410_s25 }
  0x19   :  { %367 = vmatpush3.bf16.msra.mxu0 %v364_v10 }
  0x1a   :  { %369 = vmatprep.subr.bf16.mxu0 %v368_v12  ;;  %p417_p11 = por %p416_p10, %p415_p9 }
  0x1b   :  { %379 = vmatpush3.bf16.msra.mxu1 %v376_v6 }
  0x1c   :  { %p418_p12 = pnand %p417_p11, %p411_p8 }
  0x1d   :  { %371 = vmatpush3.bf16.msra.mxu0 %v368_v12 }
  0x1e   :  { %357 = vmatmul.mubr.msk.f32.vlgmr.msra.gmra.mrb[0].mxu1 %vm48_vm0, %v36_v13  ;;  %359 = vmatprep.subr.mxu0 %v211_v14 }
  0x20   :  { %346 = vmatmul.mubr.msk.f32.vlgmr.msra.gmra.mrb[0].mxu0 %vm48_vm0, %v36_v13 }
  0x21   :  { %360 = vmatpush3.msra.mxu0 %v211_v14 }
  0xf1   :  { %v358_v15 = vpop.f32.mrb[0].mxu1 }
  0xf2   :  { %v200_v16 = vpop.f32.mrb[1].mxu1  ;;  %v210_v18 = vmul.f32 2.0, %v358_v15 }
  0xf3   :  { %v209_v17 = vmul.f32 2.0, %v200_v16 }
  0xf5   :  { %361 = vmatprep.mubr.msk.f32.mxu0 %vm212_vm1, %v209_v17 }
  0xf6   :  { %362 = vmatmul.mubr.msk.f32.vlgmr.msra.gmra.mrb[0].mxu0 %vm212_vm1, %v210_v18 }
 0x1c9   :  { %v363_v20 = vpop.f32.mrb[0].mxu0 }
 0x1ca   :  { %v380_v21 = vadd.f32 %v363_v20, %v315_v19  ;;  %v285_v22 = vpop.f32.mrb[1].mxu0 }
 0x1cb   :  { %v381_v23 = vadd.f32 %v315_v19, %v285_v22 }
 0x1cc   :  { %297 = vst [vmem:[#allocation5 + $0x8] sm:$0xff] %v380_v21 }
 0x1cd   :  { %296 = vst [vmem:[#allocation5] sm:$0xff] %v381_v23 }
 0x1ce   :  { %421 = shalt.err (!%p418_p12)
}
 0x1cf   :  { %s422_s2 = scalar_lea.hbm %s539_s5, 256 }
 0x1d0   :  { %p423_p13 = scmp.ne.s32.totalorder %s539_s5, %s422_s2  ;;  %p426_p0 = scmp.lt.u32.totalorder %s422_s2, %s539_s5 }
 0x1d2   :  { %p428_p1 = pnand %p426_p0, %p423_p13 }
 0x1d4   :  { %431 = shalt.err (!%p428_p1)
}
 0x1d5   :  { %309 = dma.vmem_to_hbm [thread:$0]  %s304_s4, 256, %s539_s5, [#allocation4], %s437_s28, %s437_s28, %s438_s29  }
 0x1d6   :  { %434 = dma.done.wait [#allocation4], 256  }
 0x1d7   :  { %435 = vsyncadd [#allocation4], 4294967040 }
 0x1d8   :  { %313 = vsyncpa [#allocation3], 1 }
 0x1d9   :  { %314 = vsyncpa [#allocation4], 1 }

</bundles_post_ra>
